<compile_context>
chip_gen: v7x
topology: tpu7x:2x2x1
jax: 0.10.0
libtpu: 0.0.40
codegen_flags: <defaults>
</compile_context>

<pallas_src>
import jax
import jax.numpy as jnp
from jax.experimental import pallas as pl
from jax.experimental.pallas import tpu as pltpu


def _tanh_kernel(so_ref, x_ref, o_ref):
    """o = s*tanh(x) + o_off for one (tile_rows, lane) block."""
    x = x_ref[...]
    if not jnp.issubdtype(x.dtype, jnp.floating):
        # In-kernel cast (torch promotes integral inputs to float for tanh).
        x = x.astype(jnp.float32)
    s = so_ref[0]
    off = so_ref[1]
    o_ref[...] = (s * jnp.tanh(x) + off).astype(o_ref.dtype)


def elementwise_tanh(x: jax.Array, o=0.0, s=1.0, *,
                     min_pallas_elements: int = 1 << 16,
                     max_lane: int = 2048,
                     target_block_bytes: int = 8 << 20) -> jax.Array:
    """Computes y = s*tanh(x) + o element-wise for an input of any shape."""
    orig_shape = x.shape
    in_dtype = x.dtype
    floating = jnp.issubdtype(in_dtype, jnp.floating)
    # torch.tanh promotes integral inputs to the default float dtype.
    out_dtype = in_dtype if floating else jnp.float32

    n = x.size
    if n == 0:
        return jnp.zeros(orig_shape, out_dtype)

    # Tiny inputs (launch overhead dominates) and 128-ragged sizes: the fused
    # XLA elementwise is memory-bound-optimal and avoids any pad/slice copies.
    if n < min_pallas_elements or n % 128 != 0:
        xf = x if floating else x.astype(jnp.float32)
        return (s * jnp.tanh(xf) + o).astype(out_dtype)

    # Lane-dense 2D view of the flat data (contiguous reshape: no copy, no pad).
    lane = 128
    for cand in (max_lane, 1024, 512, 256):
        if cand >= 128 and cand % 128 == 0 and n % cand == 0:
            lane = cand
            break
    rows = n // lane
    x2d = x.reshape(rows, lane)

    in_item = jnp.dtype(in_dtype).itemsize
    out_item = jnp.dtype(out_dtype).itemsize
    # Sublane packing granularity: 8 rows for 32-bit, 16 for 16-bit, 32 for 8-bit.
    row_align = max(8, 32 // in_item, 32 // out_item)
    # Keep (input + output) bytes per block ~ target so the ~0.35us per-grid-step
    # overhead stays small on fast-HBM chips (v7x), constant across dtypes.
    tile_rows = target_block_bytes // (lane * (in_item + out_item))
    tile_rows = max(row_align, (tile_rows // row_align) * row_align)
    if tile_rows >= rows:
        tile_rows = rows  # single full-extent block (any row count allowed)
    grid = (pl.cdiv(rows, tile_rows),)

    # Double-buffered input + output blocks, plus headroom for internal scratch.
    block_bytes = tile_rows * lane * (in_item + out_item)
    vmem_limit = max(16 << 20, min(2 * block_bytes + (8 << 20), 48 << 20))

    # scale / offset as SMEM scalars (scalar prefetch) -> no recompile per (s, o).
    so = jnp.stack([jnp.asarray(s, dtype=jnp.float32).reshape(()),
                    jnp.asarray(o, dtype=jnp.float32).reshape(())])

    out2d = pl.pallas_call(
        _tanh_kernel,
        out_shape=jax.ShapeDtypeStruct((rows, lane), out_dtype),
        grid_spec=pltpu.PrefetchScalarGridSpec(
            num_scalar_prefetch=1,
            grid=grid,
            in_specs=[pl.BlockSpec((tile_rows, lane), lambda i, so_ref: (i, 0))],
            out_specs=pl.BlockSpec((tile_rows, lane), lambda i, so_ref: (i, 0)),
        ),
        compiler_params=pltpu.CompilerParams(
            dimension_semantics=("parallel",),
            vmem_limit_bytes=int(vmem_limit),
        ),
    )(so, x2d)

    return out2d.reshape(orig_shape)


if __name__ == "__main__":
    key = jax.random.PRNGKey(0)

    # 1) Module-sized input, non-default scale/offset; force the Pallas path
    #    (min_pallas_elements=0) to exercise the kernel at this small size.
    x = jax.random.normal(key, (2, 4, 16, 16), dtype=jnp.float32)
    s, o = 1.5, 0.25
    y = jax.block_until_ready(elementwise_tanh(x, o=o, s=s, min_pallas_elements=0))
    y_ref = s * jnp.tanh(x) + o
    assert y.shape == x.shape and y.dtype == x.dtype
    assert jnp.allclose(y, y_ref, atol=1e-5, rtol=1e-5)

    # 2) Larger input, default module params (o=0, s=1): default Pallas path
    #    (lane=2048, multi-step grid), no pad / no slice.
    x2 = jax.random.normal(jax.random.PRNGKey(1), (4, 512, 384), dtype=jnp.float32)
    y2 = jax.block_until_ready(elementwise_tanh(x2))
    assert jnp.allclose(y2, jnp.tanh(x2), atol=1e-5, rtol=1e-5)

    # 3) bf16 input: dtype-scaled tiling, output stays bf16.
    x3 = jax.random.normal(jax.random.PRNGKey(2), (256, 1024), dtype=jnp.bfloat16)
    y3 = jax.block_until_ready(elementwise_tanh(x3, o=o, s=s, min_pallas_elements=0))
    y3_ref = (s * jnp.tanh(x3.astype(jnp.float32)) + o).astype(jnp.bfloat16)
    assert y3.dtype == jnp.bfloat16
    assert jnp.allclose(y3.astype(jnp.float32), y3_ref.astype(jnp.float32),
                        atol=3e-2, rtol=3e-2)

    # 4) Ragged size (not a multiple of 128): XLA fallback path, same semantics.
    x4 = jax.random.normal(jax.random.PRNGKey(3), (3, 5, 7), dtype=jnp.float32)
    y4 = jax.block_until_ready(elementwise_tanh(x4, o=o, s=s))
    assert jnp.allclose(y4, s * jnp.tanh(x4) + o, atol=1e-5, rtol=1e-5)

    print("KERNEL_OK")
</pallas_src>

<mosaic_0001>
module attributes {stable_mosaic.version = 11 : i64} {
  func.func @_tanh_kernel(%arg0: i32, %arg1: memref<2xf32, #tpu.memory_space<smem>>, %arg2: memref<1x2048xf32, #tpu.memory_space<vmem>>, %arg3: memref<1x2048xf32, #tpu.memory_space<vmem>>) attributes {dimension_semantics = [#tpu.dimension_semantics<parallel>], iteration_bounds = array<i64: 1>, scalar_prefetch = 1 : i64, scratch_operands = 0 : i64, tpu.core_type = #tpu.core_type<tc>, window_params = [{transform_indices = @transform_0, window_bounds = array<i64: 1, 2048>}, {transform_indices = @transform_1, window_bounds = array<i64: 1, 2048>}]} {
    %c0 = arith.constant 0 : index
    %c0_0 = arith.constant 0 : index
    %0 = vector.load %arg2[%c0, %c0_0] : memref<1x2048xf32, #tpu.memory_space<vmem>>, vector<1x2048xf32>
    %c0_1 = arith.constant 0 : index
    %1 = memref.load %arg1[%c0_1] : memref<2xf32, #tpu.memory_space<smem>>
    %c1 = arith.constant 1 : index
    %2 = memref.load %arg1[%c1] : memref<2xf32, #tpu.memory_space<smem>>
    %3 = math.tanh %0 : vector<1x2048xf32>
    %4 = vector.broadcast %1 : f32 to vector<1x2048xf32>
    %5 = arith.mulf %4, %3 : vector<1x2048xf32>
    %6 = vector.broadcast %2 : f32 to vector<1x2048xf32>
    %7 = arith.addf %5, %6 : vector<1x2048xf32>
    %c0_2 = arith.constant 0 : index
    %c0_3 = arith.constant 0 : index
    %8 = vector.load %arg3[%c0_2, %c0_3] : memref<1x2048xf32, #tpu.memory_space<vmem>>, vector<1x2048xf32>
    tpu.vector_store %arg3[%c0_2, %c0_3], %7 {strides = array<i32>} : memref<1x2048xf32, #tpu.memory_space<vmem>>, vector<1x2048xf32>,
    return
  }
  func.func @transform_0(%arg0: i32, %arg1: memref<2xf32, #tpu.memory_space<smem>>) -> (i32, i32) {
    %c0_i32 = arith.constant 0 : i32
    %c0_i32_0 = arith.constant 0 : i32
    return %arg0, %c0_i32 : i32, i32
  }
  func.func @transform_1(%arg0: i32, %arg1: memref<2xf32, #tpu.memory_space<smem>>) -> (i32, i32) {
    %c0_i32 = arith.constant 0 : i32
    %c0_i32_0 = arith.constant 0 : i32
    return %arg0, %c0_i32 : i32, i32
  }
}

</mosaic_0001>

<bundles_post_ra>
// kernel: tpu_custom_call.1
= control target key start
LH: loop header
LB: loop body
LE: loop exit
PB: predicated region body
PF: predicated region fallthrough
CT: control target
= control target key end

     0   :  { %s177_s0 = inlined_call_operand.hbm [shape: f32[2], index: 0, kind: input, shape index: {}]   ;;  %s178_s1 = inlined_call_operand.hbm [shape: f32[1,2048], index: 1, kind: input, shape index: {}]   ;;  %s179_s2 = inlined_call_operand.hbm [shape: f32[1,2048], index: 2, kind: output, shape index: {}]  }
   0x1   :  { %s63_s11 = scalar_lea.hbm %s177_s0, 16 }
   0x2   :  { %p64_p0 = scmp.ne.s32.totalorder %s177_s0, %s63_s11  ;;  %p67_p1 = scmp.lt.u32.totalorder %s63_s11, %s177_s0 }
   0x4   :  { %p69_p2 = pnand %p67_p1, %p64_p0 }
   0x6   :  { %72 = shalt.err (!%p69_p2)  }
   0x7   :  { %s123_s16 = smov [#allocation3]  }
   0x8   :  { %8 = dma.hbm_to_smem %s177_s0, 16, %s123_s16, [#allocation2] }
   0x9   :  { %117 = dma.done.wait [#allocation2], 16 }
   0xa   :  { %118 = vsyncadd [#allocation2], 4294967280 }
   0xb   :  { %10 = sfence }
   0xc   :  { %11 = vsyncpa [#allocation5], 0 }
   0xd   :  { %12 = vsyncpa [#allocation6], 0  ;;  %s124_s19 = smov [#allocation4]   ;;  %s73_s23 = scalar_lea.hbm %s178_s1, 256 }
   0xe   :  { %s19_s20 = sshll.u32 %s124_s19, 4  ;;  %p74_p3 = scmp.ne.s32.totalorder %s178_s1, %s73_s23  ;;  %s20_s20 = int_to_ptr.vmem [resolvable:$true] %s19_s20 }
   0xf   :  { %p77_p4 = scmp.lt.u32.totalorder %s73_s23, %s178_s1 }
  0x11   :  { %p79_p5 = pnand %p77_p4, %p74_p3 }
  0x13   :  { %82 = shalt.err (!%p79_p5)
}
  0x14   :  { %s83_s0 = scalar_lea.vmem %s20_s20, 256  ;;  %p88_p7 = scmp.lt.s32.totalorder %s20_s20, %s20_s20 }
  0x15   :  { %p84_p6 = scmp.ne.s32.totalorder %s20_s20, %s83_s0  ;;  %p89_p8 = scmp.lt.s32.totalorder %s83_s0, %s83_s0 }
  0x17   :  { %p90_p9 = por %p89_p8, %p88_p7 }
  0x19   :  { %p91_p10 = pnand %p90_p9, %p84_p6 }
  0x1b   :  { %94 = shalt.err (!%p91_p10)
}
  0x1c   :  { %22 = dma.hbm_to_vmem [thread:$0]  %s178_s1, 256, %s20_s20, [#allocation5]  }
  0x1d   :  { %119 = dma.done.wait [#allocation5], 256  }
  0x1e   :  { %120 = vsyncadd [#allocation5], 4294967040  ;;  %v26_v0 = vld [vmem:[#allocation4] sm:$0xff]  ;;  %v27_v1 = vld [vmem:[#allocation4 + $0x8] sm:$0xff]  ;;  %s28_s30 = sld [smem:[#allocation3]]  ;;  %s55_s3 = sld [smem:[#allocation3 + $0x1]] }
  0x1f   :  { %59 = vtanh.f32 %v26_v0  ;;  %s125_s4 = smov [#allocation7]  }
  0x20   :  { %61 = vtanh.f32 %v27_v1  ;;  %s46_s5 = sshll.u32 %s125_s4, 4  ;;  %s47_s5 = int_to_ptr.vmem [resolvable:$true] %s46_s5 }
  0x21   :  { %s95_s1 = scalar_lea.vmem %s47_s5, 256  ;;  %p100_p12 = scmp.lt.s32.totalorder %s47_s5, %s47_s5 }
  0x22   :  { %p96_p11 = scmp.ne.s32.totalorder %s47_s5, %s95_s1  ;;  %p101_p13 = scmp.lt.s32.totalorder %s95_s1, %s95_s1 }
  0x24   :  { %v32_v2 = vstv %s28_s30  ;;  %v35_v4 = vstv %s55_s3  ;;  %p102_p0 = por %p101_p13, %p100_p12 }
  0x26   :  { %p103_p1 = pnand %p102_p0, %p96_p11 }
  0x29   :  { %v60_v3 = vpop.eup %59 }
  0x2a   :  { %v62_v5 = vpop.eup %61  ;;  %v33_v6 = vmul.f32 %v60_v3, %v32_v2 }
  0x2b   :  { %v34_v7 = vmul.f32 %v62_v5, %v32_v2 }
  0x2c   :  { %v36_v8 = vadd.f32 %v35_v4, %v33_v6 }
  0x2d   :  { %v37_v9 = vadd.f32 %v35_v4, %v34_v7 }
  0x2e   :  { %38 = vst [vmem:[#allocation7] sm:$0xff] %v36_v8 }
  0x2f   :  { %39 = vst [vmem:[#allocation7 + $0x8] sm:$0xff] %v37_v9 }
  0x30   :  { %106 = shalt.err (!%p103_p1)
}
  0x31   :  { %s107_s8 = scalar_lea.hbm %s179_s2, 256 }
  0x32   :  { %p108_p2 = scmp.ne.s32.totalorder %s179_s2, %s107_s8  ;;  %p111_p3 = scmp.lt.u32.totalorder %s107_s8, %s179_s2 }
  0x34   :  { %p113_p4 = pnand %p111_p3, %p108_p2 }
  0x36   :  { %116 = shalt.err (!%p113_p4)
}
  0x37   :  { %49 = dma.vmem_to_hbm [thread:$0]  %s47_s5, 256, %s179_s2, [#allocation6]  }
  0x38   :  { %121 = dma.done.wait [#allocation6], 256  }
  0x39   :  { %122 = vsyncadd [#allocation6], 4294967040 }
  0x3a   :  { %53 = vsyncpa [#allocation5], 1 }
  0x3b   :  { %54 = vsyncpa [#allocation6], 1 }

</bundles_post_ra>
